<compile_context>
chip_gen: v7x
topology: tpu7x:2x2x1
jax: 0.10.0
libtpu: 0.0.40
codegen_flags: <defaults>
</compile_context>

<pallas_src>
import functools

import jax
import jax.numpy as jnp
from jax.experimental import pallas as pl
from jax.experimental.pallas import tpu as pltpu


def _cdiv(a, b):
    return (a + b - 1) // b


# ----------------------------------------------------------------------------
# VMEM budgeting / tile selection
# ----------------------------------------------------------------------------
def _vmem_limit_bytes():
    """Scoped-VMEM limit to request: min(capacity/2, 64 MiB) on every gen."""
    cap = 64 * 1024 * 1024  # conservative fallback (v7x physical VMEM)
    try:
        info = pltpu.get_tpu_info()
        cap = int(getattr(info, "vmem_capacity_bytes", cap) or cap)
    except Exception:
        pass
    return min(cap // 2, 64 * 1024 * 1024)


def _pick_tiles(H, W, C, vmem_limit):
    """(TH, TW): TH multiple of 8 (or == H), TW multiple of 128 (or == W).
    Ragged tails are masked in-kernel, so tiles are sized purely by the VMEM
    budget -- never a whole-image fallback."""
    if W <= 256:
        TW = W                       # full width (always a legal block dim)
    elif W <= 1024:
        TW = 256                     # exposes a 2nd parallel axis (v7x megacore)
    else:
        TW = 512
    # Resident bytes per pixel: 2x double-buffered logits block (f32 worst
    # case) + aux inputs (target / bf16 counts) + a few f32 temporaries.
    per_px = 12 * C + 64
    budget = max(vmem_limit // 2, 1 << 20)
    max_rows = max(8, budget // (per_px * TW))
    if max_rows >= H:
        TH = H
    elif max_rows >= 32:
        TH = (max_rows // 32) * 32   # keep int8 target tiles packing-friendly
    else:
        TH = (max_rows // 8) * 8
    return TH, TW


# ----------------------------------------------------------------------------
# Kernel 1: same-resolution head -- per-pixel CE with ignore_index from a
# (C, TH, TW) logits block and a (TH, TW) integer target block.
# ----------------------------------------------------------------------------
def _ce_target_kernel(logits_ref, tgt_ref, sum_ref, cnt_ref, acc_sum, acc_cnt,
                      *, num_classes, ignore_label, h, w, tile_h, tile_w):
    wi = pl.program_id(1)
    hi = pl.program_id(2)

    @pl.when(hi == 0)
    def _():
        acc_sum[...] = jnp.zeros(acc_sum.shape, jnp.float32)
        acc_cnt[...] = jnp.zeros(acc_cnt.shape, jnp.float32)

    # Ragged-edge masks (H/W need not be multiples of the tile sizes).
    rows = jax.lax.broadcasted_iota(jnp.int32, (tile_h, tile_w), 0)
    cols = jax.lax.broadcasted_iota(jnp.int32, (tile_h, tile_w), 1)
    inb = (rows < h - hi * tile_h) & (cols < w - wi * tile_w)

    tgt = tgt_ref[...].astype(jnp.int32)          # int8 input widened here

    # Unrolled class reduction with per-class ref reads: C-1 VPU maxes, C EUP
    # exps, C selects on dense (TH,TW) tiles; no full f32 block copy in VMEM.
    x0 = logits_ref[0].astype(jnp.float32)
    m = x0
    for c in range(1, num_classes):
        m = jnp.maximum(m, logits_ref[c].astype(jnp.float32))
    s = jnp.exp(x0 - m)
    sel = jnp.where(tgt == 0, x0, 0.0)
    for c in range(1, num_classes):
        xc = logits_ref[c].astype(jnp.float32)
        s = s + jnp.exp(xc - m)
        sel = jnp.where(tgt == c, xc, sel)
    lse = m + jnp.log(s)

    # NOTE: targets outside [0, num_classes) that are not ignore_label are a
    # precondition violation (PyTorch would raise); they contribute lse - 0.
    valid = inb & (tgt != ignore_label)
    loss_part = jnp.sum(jnp.where(valid, lse - sel, 0.0))
    cnt_part = jnp.sum(valid.astype(jnp.float32))
    acc_sum[...] += jnp.full(acc_sum.shape, loss_part, jnp.float32)
    acc_cnt[...] += jnp.full(acc_cnt.shape, cnt_part, jnp.float32)

    @pl.when(hi == pl.num_programs(2) - 1)
    def _():
        sum_ref[...] = acc_sum[...]
        cnt_ref[...] = acc_cnt[...]


# ----------------------------------------------------------------------------
# Kernel 2: low-resolution head with fused nearest-neighbor upsample.
# Reads (C, TH, TW) low-res logits, (C, TH, TW) per-class output-pixel counts
# K, and (TH, TW) valid-pixel counts V; accumulates
#     sum_p [ V_p * lse(x_p) - sum_c K_p[c] * x_p[c] ]  and  sum_p V_p.
# ----------------------------------------------------------------------------
def _ce_counts_kernel(logits_ref, k_ref, v_ref, sum_ref, cnt_ref, acc_sum,
                      acc_cnt, *, num_classes, h, w, tile_h, tile_w):
    wi = pl.program_id(1)
    hi = pl.program_id(2)

    @pl.when(hi == 0)
    def _():
        acc_sum[...] = jnp.zeros(acc_sum.shape, jnp.float32)
        acc_cnt[...] = jnp.zeros(acc_cnt.shape, jnp.float32)

    rows = jax.lax.broadcasted_iota(jnp.int32, (tile_h, tile_w), 0)
    cols = jax.lax.broadcasted_iota(jnp.int32, (tile_h, tile_w), 1)
    inb = (rows < h - hi * tile_h) & (cols < w - wi * tile_w)

    x0 = logits_ref[0].astype(jnp.float32)
    m = x0
    for c in range(1, num_classes):
        m = jnp.maximum(m, logits_ref[c].astype(jnp.float32))
    s = jnp.exp(x0 - m)
    wsum = k_ref[0].astype(jnp.float32) * x0
    for c in range(1, num_classes):
        xc = logits_ref[c].astype(jnp.float32)
        s = s + jnp.exp(xc - m)
        wsum = wsum + k_ref[c].astype(jnp.float32) * xc
    lse = m + jnp.log(s)
    v = v_ref[...].astype(jnp.float32)

    loss_part = jnp.sum(jnp.where(inb, v * lse - wsum, 0.0))
    cnt_part = jnp.sum(jnp.where(inb, v, 0.0))
    acc_sum[...] += jnp.full(acc_sum.shape, loss_part, jnp.float32)
    acc_cnt[...] += jnp.full(acc_cnt.shape, cnt_part, jnp.float32)

    @pl.when(hi == pl.num_programs(2) - 1)
    def _():
        sum_ref[...] = acc_sum[...]
        cnt_ref[...] = acc_cnt[...]


# ----------------------------------------------------------------------------
# Shared pallas_call driver: grid (N, W-chunks, H-chunks), H innermost.
# ----------------------------------------------------------------------------
def _run_ce(kernel, inputs, in_specs, N, C, H, W, TH, TW, vmem_limit, in_bytes):
    n_h, n_w = _cdiv(H, TH), _cdiv(W, TW)
    out_part = jax.ShapeDtypeStruct((N, n_w, 8, 128), jnp.float32)
    out_spec = pl.BlockSpec((1, 1, 8, 128), lambda n, wi, hi: (n, wi, 0, 0))
    cost = pl.CostEstimate(
        flops=int(N * H * W * (6 * C + 8)),
        transcendentals=int(N * H * W * (C + 1)),
        bytes_accessed=int(in_bytes + 2 * N * n_w * 8 * 128 * 4))
    sums, cnts = pl.pallas_call(
        kernel,
        out_shape=(out_part, out_part),
        grid_spec=pltpu.PrefetchScalarGridSpec(
            num_scalar_prefetch=0,
            grid=(N, n_w, n_h),
            in_specs=in_specs,
            out_specs=[out_spec, out_spec],
            scratch_shapes=[pltpu.VMEM((1, 1, 8, 128), jnp.float32),
                            pltpu.VMEM((1, 1, 8, 128), jnp.float32)],
        ),
        compiler_params=pltpu.CompilerParams(
            dimension_semantics=("parallel", "parallel", "arbitrary"),
            vmem_limit_bytes=vmem_limit),
        cost_estimate=cost,
    )(*inputs)
    return jnp.sum(sums[:, :, 0, 0]), jnp.sum(cnts[:, :, 0, 0])


def _ce2d_from_target(logits, target, *, ignore_label):
    """(sum of per-pixel losses, number of non-ignored pixels)."""
    N, C, H, W = logits.shape
    vmem_limit = _vmem_limit_bytes()
    TH, TW = _pick_tiles(H, W, C, vmem_limit)
    kernel = functools.partial(_ce_target_kernel, num_classes=C,
                               ignore_label=ignore_label,
                               h=H, w=W, tile_h=TH, tile_w=TW)
    in_specs = [
        pl.BlockSpec((None, C, TH, TW), lambda n, wi, hi: (n, 0, hi, wi)),
        pl.BlockSpec((None, TH, TW), lambda n, wi, hi: (n, hi, wi)),
    ]
    in_bytes = (logits.size * logits.dtype.itemsize
                + target.size * target.dtype.itemsize)
    return _run_ce(kernel, (logits, target), in_specs,
                   N, C, H, W, TH, TW, vmem_limit, in_bytes)


def _ce2d_from_counts(logits, k_counts, v_counts):
    """Same, but over low-res logits with precomputed per-pixel class counts."""
    N, C, H, W = logits.shape
    vmem_limit = _vmem_limit_bytes()
    TH, TW = _pick_tiles(H, W, C, vmem_limit)
    kernel = functools.partial(_ce_counts_kernel, num_classes=C,
                               h=H, w=W, tile_h=TH, tile_w=TW)
    in_specs = [
        pl.BlockSpec((None, C, TH, TW), lambda n, wi, hi: (n, 0, hi, wi)),
        pl.BlockSpec((None, C, TH, TW), lambda n, wi, hi: (n, 0, hi, wi)),
        pl.BlockSpec((None, TH, TW), lambda n, wi, hi: (n, hi, wi)),
    ]
    in_bytes = (logits.size * logits.dtype.itemsize
                + k_counts.size * k_counts.dtype.itemsize
                + v_counts.size * v_counts.dtype.itemsize)
    return _run_ce(kernel, (logits, k_counts, v_counts), in_specs,
                   N, C, H, W, TH, TW, vmem_limit, in_bytes)


# ----------------------------------------------------------------------------
# Wrapper-side glue
# ----------------------------------------------------------------------------
def _narrow_target(target, num_classes, ignore_label):
    """Shrink HBM bytes/pixel for the label plane when values fit int8."""
    if num_classes <= 128 and -128 <= ignore_label <= 127:
        return target.astype(jnp.int8)
    return target.astype(jnp.int32)


def _aggregate_counts(target, num_classes, ignore_label, sh, sw):
    """Per-low-res-pixel class counts K (N,C,h/sh,w/sw) and valid counts
    V (N,h/sh,w/sw) for an integer-factor nearest-neighbor upsample.  Counts
    are exact in bf16 for sh*sw <= 256.  XLA fuses the compare+reduce; only
    the small low-res K/V ever hit HBM."""
    t = target.astype(jnp.int32)
    N, h, w = t.shape
    Hi, Wi = h // sh, w // sw
    tb = t.reshape(N, Hi, sh, Wi, sw)
    valid = tb != ignore_label
    cls = jnp.arange(num_classes, dtype=jnp.int32).reshape(1, num_classes, 1, 1, 1, 1)
    onehot = (tb[:, None] == cls) & valid[:, None]
    cnt_dtype = jnp.bfloat16 if sh * sw <= 256 else jnp.float32
    K = onehot.sum(axis=(3, 5), dtype=jnp.float32).astype(cnt_dtype)
    V = valid.sum(axis=(2, 4), dtype=jnp.float32).astype(cnt_dtype)
    return K, V


def _nearest_interp_nchw(x, size):
    """Matches F.interpolate(mode='nearest'); only used for non-integer scale
    factors and by the pure-JAX reference."""
    N, C, H, W = x.shape
    h, w = size
    if (H, W) == (h, w):
        return x
    rows = jnp.floor(jnp.arange(h) * (H / h)).astype(jnp.int32)
    cols = jnp.floor(jnp.arange(w) * (W / w)).astype(jnp.int32)
    return x[:, :, rows[:, None], cols[None, :]]


# ----------------------------------------------------------------------------
# Module-equivalent wrapper.
# ----------------------------------------------------------------------------
class CrossEntropyPallas:
    def __init__(self, ignore_label=-1, weight=None, model_num_outputs=3,
                 loss_balance_weights=None):
        # TODO(synk): per-class `weight` of nn.CrossEntropyLoss not implemented (default None).
        assert weight is None
        self.ignore_label = ignore_label
        self.model_num_outputs = model_num_outputs
        self.loss_balance_weights = loss_balance_weights

    def _forward(self, score, target):
        h, w = target.shape[1], target.shape[2]
        num_classes = score.shape[1]
        ph, pw = score.shape[2], score.shape[3]
        if (ph, pw) == (h, w):
            tgt = _narrow_target(target, num_classes, self.ignore_label)
            total, count = _ce2d_from_target(score, tgt,
                                             ignore_label=self.ignore_label)
        elif h % ph == 0 and w % pw == 0:
            # Fused nearest-neighbor upsample: never materialize upsampled logits.
            sh, sw = h // ph, w // pw
            K, V = _aggregate_counts(target, num_classes, self.ignore_label, sh, sw)
            total, count = _ce2d_from_counts(score, K, V)
        else:
            # TODO(synk): non-integer nearest scale factors fall back to
            # materializing the upsampled logits once in HBM.
            score = _nearest_interp_nchw(score, (h, w))
            tgt = _narrow_target(target, num_classes, self.ignore_label)
            total, count = _ce2d_from_target(score, tgt,
                                             ignore_label=self.ignore_label)
        return total / count

    def __call__(self, score, target):
        if self.model_num_outputs == 1:
            score = [score]
        weights = self.loss_balance_weights
        assert len(weights) == len(score)
        return sum(w * self._forward(x, target) for w, x in zip(weights, score))


# ----------------------------------------------------------------------------
# Pure-JAX reference for sanity checking.
# ----------------------------------------------------------------------------
def _ref_ce_2d(logits_nchw, target_nhw, ignore_label=-1):
    N, C, H, W = logits_nchw.shape
    x = jnp.transpose(logits_nchw, (0, 2, 3, 1)).reshape(-1, C).astype(jnp.float32)
    t = target_nhw.reshape(-1)
    lse = jax.scipy.special.logsumexp(x, axis=-1)
    sel = jnp.take_along_axis(x, jnp.clip(t, 0, C - 1)[:, None], axis=-1)[:, 0]
    valid = (t != ignore_label)
    loss = jnp.where(valid, lse - sel, 0.0)
    return jnp.sum(loss) / jnp.sum(valid.astype(jnp.float32))


if __name__ == "__main__":
    key = jax.random.PRNGKey(0)
    N, C = 2, 4
    H, W = 16, 16

    k1, k2, k3, k4 = jax.random.split(key, 4)
    # three model outputs (typical multi-head seg model), one at half resolution
    score0 = jax.random.normal(k1, (N, C, H, W), dtype=jnp.float32)
    score1 = jax.random.normal(k2, (N, C, H // 2, W // 2), dtype=jnp.float32)
    score2 = jax.random.normal(k3, (N, C, H, W), dtype=jnp.float32)
    scores = [score0, score1, score2]

    # targets in [0, C) with ~10% ignored pixels (label -1)
    target = jax.random.randint(k4, (N, H, W), 0, C, dtype=jnp.int32)
    ign_mask = jax.random.uniform(k4, (N, H, W)) < 0.1
    target = jnp.where(ign_mask, -1, target)

    crit = CrossEntropyPallas(ignore_label=-1, model_num_outputs=3,
                              loss_balance_weights=[0.4, 1.0, 0.5])

    loss = crit(scores, target)
    loss = jax.block_until_ready(loss)

    # sanity check against a pure-JAX reference
    ref = sum(w * _ref_ce_2d(_nearest_interp_nchw(s, (H, W)), target)
              for w, s in zip([0.4, 1.0, 0.5], scores))
    assert jnp.allclose(loss, ref, rtol=1e-4, atol=1e-4), (loss, ref)

    print("KERNEL_OK")
</pallas_src>

<mosaic_0001>
module attributes {stable_mosaic.version = 11 : i64} {
  func.func @_ce_target_kernel(%arg0: i32, %arg1: i32, %arg2: i32, %arg3: memref<1x4x16x16xf32, #tpu.memory_space<vmem>>, %arg4: memref<1x16x16xi8, #tpu.memory_space<vmem>>, %arg5: memref<1x1x8x128xf32, #tpu.memory_space<vmem>>, %arg6: memref<1x1x8x128xf32, #tpu.memory_space<vmem>>, %arg7: memref<1x1x8x128xf32, #tpu.memory_space<vmem>>, %arg8: memref<1x1x8x128xf32, #tpu.memory_space<vmem>>) attributes {dimension_semantics = [#tpu.dimension_semantics<parallel>, #tpu.dimension_semantics<parallel>, #tpu.dimension_semantics<arbitrary>], iteration_bounds = array<i64: 2, 1, 1>, scalar_prefetch = 0 : i64, scratch_operands = 2 : i64, tpu.core_type = #tpu.core_type<tc>, window_params = [{transform_indices = @transform_0, window_bounds = array<i64: 1, 4, 16, 16>}, {transform_indices = @transform_1, window_bounds = array<i64: 1, 16, 16>}, {transform_indices = @transform_2, window_bounds = array<i64: 1, 1, 8, 128>}, {transform_indices = @transform_3, window_bounds = array<i64: 1, 1, 8, 128>}]} {
    %c0_i32 = arith.constant 0 : i32
    %0 = arith.cmpi eq, %arg2, %c0_i32 : i32
    %1 = arith.extui %0 : i1 to i32
    %c0_i32_0 = arith.constant 0 : i32
    %2 = arith.cmpi ne, %1, %c0_i32_0 : i32
    scf.if %2 {
      %cst_53 = arith.constant 0.000000e+00 : f32
      %87 = vector.broadcast %cst_53 : f32 to vector<1x1x8x128xf32>
      %c0_54 = arith.constant 0 : index
      %c0_55 = arith.constant 0 : index
      %c0_56 = arith.constant 0 : index
      %c0_57 = arith.constant 0 : index
      %88 = vector.load %arg7[%c0_54, %c0_55, %c0_56, %c0_57] : memref<1x1x8x128xf32, #tpu.memory_space<vmem>>, vector<1x1x8x128xf32>
      tpu.vector_store %arg7[%c0_54, %c0_55, %c0_56, %c0_57], %87 {strides = array<i32>} : memref<1x1x8x128xf32, #tpu.memory_space<vmem>>, vector<1x1x8x128xf32>,
      %cst_58 = arith.constant 0.000000e+00 : f32
      %89 = vector.broadcast %cst_58 : f32 to vector<1x1x8x128xf32>
      %c0_59 = arith.constant 0 : index
      %c0_60 = arith.constant 0 : index
      %c0_61 = arith.constant 0 : index
      %c0_62 = arith.constant 0 : index
      %90 = vector.load %arg8[%c0_59, %c0_60, %c0_61, %c0_62] : memref<1x1x8x128xf32, #tpu.memory_space<vmem>>, vector<1x1x8x128xf32>
      tpu.vector_store %arg8[%c0_59, %c0_60, %c0_61, %c0_62], %89 {strides = array<i32>} : memref<1x1x8x128xf32, #tpu.memory_space<vmem>>, vector<1x1x8x128xf32>,
    } else {
    }
    %3 = tpu.iota {dimensions = array<i32: 0>} : vector<16x16xi32>
    %4 = tpu.iota {dimensions = array<i32: 1>} : vector<16x16xi32>
    %c16_i32 = arith.constant 16 : i32
    %5 = arith.muli %arg2, %c16_i32 : i32
    %c16_i32_1 = arith.constant 16 : i32
    %6 = arith.subi %c16_i32_1, %5 : i32
    %7 = vector.broadcast %6 : i32 to vector<16x16xi32>
    %8 = arith.cmpi slt, %3, %7 : vector<16x16xi32>
    %c16_i32_2 = arith.constant 16 : i32
    %9 = arith.muli %arg1, %c16_i32_2 : i32
    %c16_i32_3 = arith.constant 16 : i32
    %10 = arith.subi %c16_i32_3, %9 : i32
    %11 = vector.broadcast %10 : i32 to vector<16x16xi32>
    %12 = arith.cmpi slt, %4, %11 : vector<16x16xi32>
    %13 = arith.andi %8, %12 : vector<16x16xi1>
    %c0 = arith.constant 0 : index
    %c0_4 = arith.constant 0 : index
    %c0_5 = arith.constant 0 : index
    %14 = vector.load %arg4[%c0, %c0_4, %c0_5] : memref<1x16x16xi8, #tpu.memory_space<vmem>>, vector<1x16x16xi8>
    %15 = vector.shape_cast %14 : vector<1x16x16xi8> to vector<16x16xi8>
    %16 = arith.extsi %15 : vector<16x16xi8> to vector<16x16xi32>
    %c0_6 = arith.constant 0 : index
    %c0_7 = arith.constant 0 : index
    %c0_8 = arith.constant 0 : index
    %c0_9 = arith.constant 0 : index
    %17 = vector.load %arg3[%c0_6, %c0_7, %c0_8, %c0_9] : memref<1x4x16x16xf32, #tpu.memory_space<vmem>>, vector<1x1x16x16xf32>
    %18 = vector.shape_cast %17 : vector<1x1x16x16xf32> to vector<16x16xf32>
    %c0_10 = arith.constant 0 : index
    %c1 = arith.constant 1 : index
    %c0_11 = arith.constant 0 : index
    %c0_12 = arith.constant 0 : index
    %19 = vector.load %arg3[%c0_10, %c1, %c0_11, %c0_12] : memref<1x4x16x16xf32, #tpu.memory_space<vmem>>, vector<1x1x16x16xf32>
    %20 = vector.shape_cast %19 : vector<1x1x16x16xf32> to vector<16x16xf32>
    %21 = arith.maximumf %18, %20 : vector<16x16xf32>
    %c0_13 = arith.constant 0 : index
    %c2 = arith.constant 2 : index
    %c0_14 = arith.constant 0 : index
    %c0_15 = arith.constant 0 : index
    %22 = vector.load %arg3[%c0_13, %c2, %c0_14, %c0_15] : memref<1x4x16x16xf32, #tpu.memory_space<vmem>>, vector<1x1x16x16xf32>
    %23 = vector.shape_cast %22 : vector<1x1x16x16xf32> to vector<16x16xf32>
    %24 = arith.maximumf %21, %23 : vector<16x16xf32>
    %c0_16 = arith.constant 0 : index
    %c3 = arith.constant 3 : index
    %c0_17 = arith.constant 0 : index
    %c0_18 = arith.constant 0 : index
    %25 = vector.load %arg3[%c0_16, %c3, %c0_17, %c0_18] : memref<1x4x16x16xf32, #tpu.memory_space<vmem>>, vector<1x1x16x16xf32>
    %26 = vector.shape_cast %25 : vector<1x1x16x16xf32> to vector<16x16xf32>
    %27 = arith.maximumf %24, %26 : vector<16x16xf32>
    %28 = arith.subf %18, %27 : vector<16x16xf32>
    %29 = math.exp %28 : vector<16x16xf32>
    %c0_i32_19 = arith.constant 0 : i32
    %30 = vector.broadcast %c0_i32_19 : i32 to vector<16x16xi32>
    %31 = arith.cmpi eq, %16, %30 : vector<16x16xi32>
    %cst = arith.constant 0.000000e+00 : f32
    %32 = vector.broadcast %cst : f32 to vector<16x16xf32>
    %33 = arith.select %31, %18, %32 : vector<16x16xi1>, vector<16x16xf32>
    %c0_20 = arith.constant 0 : index
    %c1_21 = arith.constant 1 : index
    %c0_22 = arith.constant 0 : index
    %c0_23 = arith.constant 0 : index
    %34 = vector.load %arg3[%c0_20, %c1_21, %c0_22, %c0_23] : memref<1x4x16x16xf32, #tpu.memory_space<vmem>>, vector<1x1x16x16xf32>
    %35 = vector.shape_cast %34 : vector<1x1x16x16xf32> to vector<16x16xf32>
    %36 = arith.subf %35, %27 : vector<16x16xf32>
    %37 = math.exp %36 : vector<16x16xf32>
    %38 = arith.addf %29, %37 : vector<16x16xf32>
    %c1_i32 = arith.constant 1 : i32
    %39 = vector.broadcast %c1_i32 : i32 to vector<16x16xi32>
    %40 = arith.cmpi eq, %16, %39 : vector<16x16xi32>
    %41 = arith.select %40, %35, %33 : vector<16x16xi1>, vector<16x16xf32>
    %c0_24 = arith.constant 0 : index
    %c2_25 = arith.constant 2 : index
    %c0_26 = arith.constant 0 : index
    %c0_27 = arith.constant 0 : index
    %42 = vector.load %arg3[%c0_24, %c2_25, %c0_26, %c0_27] : memref<1x4x16x16xf32, #tpu.memory_space<vmem>>, vector<1x1x16x16xf32>
    %43 = vector.shape_cast %42 : vector<1x1x16x16xf32> to vector<16x16xf32>
    %44 = arith.subf %43, %27 : vector<16x16xf32>
    %45 = math.exp %44 : vector<16x16xf32>
    %46 = arith.addf %38, %45 : vector<16x16xf32>
    %c2_i32 = arith.constant 2 : i32
    %47 = vector.broadcast %c2_i32 : i32 to vector<16x16xi32>
    %48 = arith.cmpi eq, %16, %47 : vector<16x16xi32>
    %49 = arith.select %48, %43, %41 : vector<16x16xi1>, vector<16x16xf32>
    %c0_28 = arith.constant 0 : index
    %c3_29 = arith.constant 3 : index
    %c0_30 = arith.constant 0 : index
    %c0_31 = arith.constant 0 : index
    %50 = vector.load %arg3[%c0_28, %c3_29, %c0_30, %c0_31] : memref<1x4x16x16xf32, #tpu.memory_space<vmem>>, vector<1x1x16x16xf32>
    %51 = vector.shape_cast %50 : vector<1x1x16x16xf32> to vector<16x16xf32>
    %52 = arith.subf %51, %27 : vector<16x16xf32>
    %53 = math.exp %52 : vector<16x16xf32>
    %54 = arith.addf %46, %53 : vector<16x16xf32>
    %c3_i32 = arith.constant 3 : i32
    %55 = vector.broadcast %c3_i32 : i32 to vector<16x16xi32>
    %56 = arith.cmpi eq, %16, %55 : vector<16x16xi32>
    %57 = arith.select %56, %51, %49 : vector<16x16xi1>, vector<16x16xf32>
    %58 = math.log %54 : vector<16x16xf32>
    %59 = arith.addf %27, %58 : vector<16x16xf32>
    %c-1_i32 = arith.constant -1 : i32
    %60 = vector.broadcast %c-1_i32 : i32 to vector<16x16xi32>
    %61 = arith.cmpi ne, %16, %60 : vector<16x16xi32>
    %62 = arith.andi %13, %61 : vector<16x16xi1>
    %63 = arith.subf %59, %57 : vector<16x16xf32>
    %cst_32 = arith.constant 0.000000e+00 : f32
    %64 = vector.broadcast %cst_32 : f32 to vector<16x16xf32>
    %65 = arith.select %62, %63, %64 : vector<16x16xi1>, vector<16x16xf32>
    %66 = vector.shape_cast %65 : vector<16x16xf32> to vector<1x16x16xf32>
    %cst_33 = arith.constant dense<0.000000e+00> : vector<1xf32>
    %67 = vector.multi_reduction <add>, %66, %cst_33 [1, 2] : vector<1x16x16xf32> to vector<1xf32>
    %68 = vector.shape_cast %67 : vector<1xf32> to vector<1x1x1xf32>
    %69 = vector.extract %68[0, 0, 0] : f32 from vector<1x1x1xf32>
    %70 = arith.extui %62 : vector<16x16xi1> to vector<16x16xi32>
    %71 = arith.sitofp %70 : vector<16x16xi32> to vector<16x16xf32>
    %72 = vector.shape_cast %71 : vector<16x16xf32> to vector<1x16x16xf32>
    %cst_34 = arith.constant dense<0.000000e+00> : vector<1xf32>
    %73 = vector.multi_reduction <add>, %72, %cst_34 [1, 2] : vector<1x16x16xf32> to vector<1xf32>
    %74 = vector.shape_cast %73 : vector<1xf32> to vector<1x1x1xf32>
    %75 = vector.extract %74[0, 0, 0] : f32 from vector<1x1x1xf32>
    %c0_35 = arith.constant 0 : index
    %c0_36 = arith.constant 0 : index
    %c0_37 = arith.constant 0 : index
    %c0_38 = arith.constant 0 : index
    %76 = vector.load %arg7[%c0_35, %c0_36, %c0_37, %c0_38] : memref<1x1x8x128xf32, #tpu.memory_space<vmem>>, vector<1x1x8x128xf32>
    %77 = vector.broadcast %69 : f32 to vector<1x1x8x128xf32>
    %78 = arith.addf %76, %77 : vector<1x1x8x128xf32>
    %c0_39 = arith.constant 0 : index
    %c0_40 = arith.constant 0 : index
    %c0_41 = arith.constant 0 : index
    %c0_42 = arith.constant 0 : index
    %79 = vector.load %arg7[%c0_39, %c0_40, %c0_41, %c0_42] : memref<1x1x8x128xf32, #tpu.memory_space<vmem>>, vector<1x1x8x128xf32>
    tpu.vector_store %arg7[%c0_39, %c0_40, %c0_41, %c0_42], %78 {strides = array<i32>} : memref<1x1x8x128xf32, #tpu.memory_space<vmem>>, vector<1x1x8x128xf32>,
    %c0_43 = arith.constant 0 : index
    %c0_44 = arith.constant 0 : index
    %c0_45 = arith.constant 0 : index
    %c0_46 = arith.constant 0 : index
    %80 = vector.load %arg8[%c0_43, %c0_44, %c0_45, %c0_46] : memref<1x1x8x128xf32, #tpu.memory_space<vmem>>, vector<1x1x8x128xf32>
    %81 = vector.broadcast %75 : f32 to vector<1x1x8x128xf32>
    %82 = arith.addf %80, %81 : vector<1x1x8x128xf32>
    %c0_47 = arith.constant 0 : index
    %c0_48 = arith.constant 0 : index
    %c0_49 = arith.constant 0 : index
    %c0_50 = arith.constant 0 : index
    %83 = vector.load %arg8[%c0_47, %c0_48, %c0_49, %c0_50] : memref<1x1x8x128xf32, #tpu.memory_space<vmem>>, vector<1x1x8x128xf32>
    tpu.vector_store %arg8[%c0_47, %c0_48, %c0_49, %c0_50], %82 {strides = array<i32>} : memref<1x1x8x128xf32, #tpu.memory_space<vmem>>, vector<1x1x8x128xf32>,
    %c0_i32_51 = arith.constant 0 : i32
    %84 = arith.cmpi eq, %arg2, %c0_i32_51 : i32
    %85 = arith.extui %84 : i1 to i32
    %c0_i32_52 = arith.constant 0 : i32
    %86 = arith.cmpi ne, %85, %c0_i32_52 : i32
    scf.if %86 {
      %c0_53 = arith.constant 0 : index
      %c0_54 = arith.constant 0 : index
      %c0_55 = arith.constant 0 : index
      %c0_56 = arith.constant 0 : index
      %87 = vector.load %arg7[%c0_53, %c0_54, %c0_55, %c0_56] : memref<1x1x8x128xf32, #tpu.memory_space<vmem>>, vector<1x1x8x128xf32>
      %c0_57 = arith.constant 0 : index
      %c0_58 = arith.constant 0 : index
      %c0_59 = arith.constant 0 : index
      %c0_60 = arith.constant 0 : index
      %88 = vector.load %arg5[%c0_57, %c0_58, %c0_59, %c0_60] : memref<1x1x8x128xf32, #tpu.memory_space<vmem>>, vector<1x1x8x128xf32>
      tpu.vector_store %arg5[%c0_57, %c0_58, %c0_59, %c0_60], %87 {strides = array<i32>} : memref<1x1x8x128xf32, #tpu.memory_space<vmem>>, vector<1x1x8x128xf32>,
      %c0_61 = arith.constant 0 : index
      %c0_62 = arith.constant 0 : index
      %c0_63 = arith.constant 0 : index
      %c0_64 = arith.constant 0 : index
      %89 = vector.load %arg8[%c0_61, %c0_62, %c0_63, %c0_64] : memref<1x1x8x128xf32, #tpu.memory_space<vmem>>, vector<1x1x8x128xf32>
      %c0_65 = arith.constant 0 : index
      %c0_66 = arith.constant 0 : index
      %c0_67 = arith.constant 0 : index
      %c0_68 = arith.constant 0 : index
      %90 = vector.load %arg6[%c0_65, %c0_66, %c0_67, %c0_68] : memref<1x1x8x128xf32, #tpu.memory_space<vmem>>, vector<1x1x8x128xf32>
      tpu.vector_store %arg6[%c0_65, %c0_66, %c0_67, %c0_68], %89 {strides = array<i32>} : memref<1x1x8x128xf32, #tpu.memory_space<vmem>>, vector<1x1x8x128xf32>,
    } else {
    }
    return
  }
  func.func @transform_0(%arg0: i32, %arg1: i32, %arg2: i32) -> (i32, i32, i32, i32) {
    %c0_i32 = arith.constant 0 : i32
    %c0_i32_0 = arith.constant 0 : i32
    return %arg0, %c0_i32, %arg2, %arg1 : i32, i32, i32, i32
  }
  func.func @transform_1(%arg0: i32, %arg1: i32, %arg2: i32) -> (i32, i32, i32) {
    %c0_i32 = arith.constant 0 : i32
    return %arg0, %arg2, %arg1 : i32, i32, i32
  }
  func.func @transform_2(%arg0: i32, %arg1: i32, %arg2: i32) -> (i32, i32, i32, i32) {
    %c0_i32 = arith.constant 0 : i32
    %c0_i32_0 = arith.constant 0 : i32
    %c0_i32_1 = arith.constant 0 : i32
    return %arg0, %arg1, %c0_i32, %c0_i32_0 : i32, i32, i32, i32
  }
  func.func @transform_3(%arg0: i32, %arg1: i32, %arg2: i32) -> (i32, i32, i32, i32) {
    %c0_i32 = arith.constant 0 : i32
    %c0_i32_0 = arith.constant 0 : i32
    %c0_i32_1 = arith.constant 0 : i32
    return %arg0, %arg1, %c0_i32, %c0_i32_0 : i32, i32, i32, i32
  }
}

</mosaic_0001>

<bundles_post_ra>
// kernel: tpu_custom_call.1
= control target key start
LH: loop header
LB: loop body
LE: loop exit
PB: predicated region body
PF: predicated region fallthrough
CT: control target
= control target key end

     0   :  { %9 = vsyncpa [#allocation5], 0  ;;  %s1259_s0 = inlined_call_operand.hbm [shape: f32[2,4,16,16], index: 0, kind: input, shape index: {}]   ;;  %s1260_s1 = inlined_call_operand.hbm [shape: s8[2,16,16], index: 1, kind: input, shape index: {}]   ;;  %s1261_s2 = inlined_call_operand.hbm [shape: f32[2,1,8,128], index: 2, kind: output, shape index: {0}]   ;;  %s1262_s3 = inlined_call_operand.hbm [shape: f32[2,1,8,128], index: 3, kind: output, shape index: {1}]  }
   0x1   :  { %11 = vsyncpa [#allocation5 + $0x1], 0 }
   0x2   :  { %12 = vsyncpa [#allocation8], 0 }
   0x3   :  { %14 = vsyncpa [#allocation8 + $0x1], 0 }
   0x4   :  { %15 = vsyncpa [#allocation6], 0 }
   0x5   :  { %17 = vsyncpa [#allocation6 + $0x1], 0 }
   0x6   :  { %18 = vsyncpa [#allocation11], 0 }
   0x7   :  { %20 = vsyncpa [#allocation11 + $0x1], 0  ;;  %s951_s12 = smov 0   ;;  %s953_s13 = smov 0  }
   0x8   :  { %s955_s14 = smov 0   ;;  %s957_s15 = smov 0  }
   0x9   :  { %s959_s16 = smov 0   ;;  %s961_s17 = smov 0  }
   0xa LB: > { %s606_s18 = sadd.s32 4294967295, %s920_s17   ;;  %s607_s19 = sadd.s32 4294967294, %s920_s17   ;;  %s920_s17 = sphi %s961_s17, %s26_s17   ;;  %s916_s16 = sphi %s959_s16, %s1280_s16   ;;  %s912_s15 = sphi %s957_s15, %s1279_s15   ;;  %s908_s14 = sphi %s955_s14, %s1278_s14   ;;  %s904_s13 = sphi %s953_s13, %s1277_s13   ;;  %s900_s12 = sphi %s951_s12, %s1276_s12  }
   0xb   : > { %s45_s20 = sadd.s32 1, %s916_s16  ;;  %s56_s21 = sadd.s32 1, %s908_s14 }
   0xc   : > { %p47_p0 = scmp.ge.s32.totalorder %s45_s20, 2  ;;  %p63_p1 = scmp.ne.s32.totalorder %s908_s14, %s904_s13 }
   0xd   : > { %p64_p2 = scmp.eq.s32.totalorder %s920_s17, 0  ;;  %p69_p3 = scmp.ne.s32.totalorder %s904_s13, %s900_s12 }
   0xe   : > { %s1282_s20 = smov (%p47_p0, %s45_s20), 0  ;;  %p70_p5 = scmp.eq.s32.totalorder %s606_s18, 0 }
   0xf   : > { %p992_p4 = por %p64_p2, %p63_p1  ;;  %s49_s23 = ssub.s32 %s916_s16, %s1282_s20 }
  0x10   : > { %p125_p6 = scmp.eq.s32.totalorder %s606_s18, 1  ;;  %p54_p7 = scmp.eq.s32.totalorder %s49_s23, 0 }
  0x11   : > { %p998_p8 = por %p70_p5, %p69_p3  ;;  %p131_p10 = scmp.eq.s32.totalorder %s607_s19, 1 }
  0x12   : > { %p1002_p9 = por %p125_p6, %p63_p1  ;;  %p667_p13 = scmp.lt.s32.totalorder %s920_s17, 2 }
  0x13   : > { %s1266_s24 = scalar_select %p998_p8, 1, 0 }
  0x14   : > { %s1267_s25 = scalar_select %p1002_p9, 1, 0 }
  0x15   : > { %s1007_s26 = scalar_select %p54_p7, %s908_s14, %s56_s21  }
  0x16   : > { %p1009_p11 = por %p131_p10, %p69_p3  ;;  %s1016_s28 = sand.u32 1, %s908_s14  }
  0x17   : > { %s610_s29 = sshll.u32 %s1016_s28, 6  ;;  %s635_s30 = sshll.u32 %s916_s16, 10 }
  0x18   : > { %s1268_s27 = scalar_select %p1009_p11, 1, 0 }
  0x19   : > { %s1023_s6 = scalar_lea.hbm %s1259_s0, %s635_s30  ;;  %s183_s7 = scalar_lea.vmem [#allocation4], %s610_s29 }
  0x1a   : > { %s193_s8 = sshll.u32 %s183_s7, 4  ;;  %p1029_p0 = pnand %p667_p13, %p992_p4  ;;  %s1025_s8 = int_to_ptr.vmem [resolvable:$true] %s193_s8 }
  0x1b   : > { %s180_s10 = scalar_lea.sflag [#allocation5], %s1016_s28  ;;  %s742_s11 = scalar_lea.hbm %s1023_s6, 1024 }
  0x1c   : > { %p743_p2 = scmp.ne.s32.totalorder %s1023_s6, %s742_s11  ;;  %p744_p3 = pneg %p1029_p0 }
  0x1d   : > { %s747_s21 = scalar_lea.hbm %s1259_s0, 2048  ;;  %p748_p4 = scmp.lt.u32.totalorder %s1023_s6, %s1259_s0 }
  0x1e   : > { %p745_p5 = pnand %p744_p3, %p743_p2  ;;  %p749_p7 = scmp.lt.u32.totalorder %s747_s21, %s742_s11 }
  0x1f   : > { %p751_p13 = scmp.lt.u32.totalorder %s742_s11, %s1023_s6 }
  0x20   : > { %p746_p6 = pneg %p745_p5  ;;  %p750_p10 = por %p749_p7, %p748_p4 }
  0x22   : > { %p752_p12 = por %p751_p13, %p750_p10 }
  0x24   : > { %p753_p1 = pnand %p752_p12, %p746_p6 }
  0x26   : > { %756 = shalt.err (!%p753_p1)
}
  0x27   : > { %s757_s29 = scalar_lea.vmem %s1025_s8, 1024  ;;  %s922_s30 = smov [#allocation4]  }
  0x28   : > { %p758_p2 = scmp.ne.s32.totalorder %s1025_s8, %s757_s29  ;;  %s762_s4 = sshll.u32 %s922_s30, 4  ;;  %s763_s4 = int_to_ptr.vmem [resolvable:$false] %s762_s4 }
  0x29   : > { %s764_s5 = scalar_lea.vmem %s763_s4, 2048  ;;  %p765_p9 = scmp.lt.s32.totalorder %s1025_s8, %s763_s4 }
  0x2a   : > { %p760_p5 = pnand %p758_p2, %p744_p3  ;;  %p766_p4 = scmp.lt.s32.totalorder %s764_s5, %s757_s29 }
  0x2c   : > { %p761_p11 = pneg %p760_p5  ;;  %p767_p7 = por %p766_p4, %p765_p9 }
  0x2e   : > { %p768_p10 = pnand %p767_p7, %p761_p11 }
  0x30   : > { %771 = shalt.err (!%p768_p10)
}
  0x31   : > { %s923_s7 = smov 128   ;;  %s924_s11 = smov 8  }
  0x32   : > { %656 = dma.hbm_to_vmem [thread:$0]  (!%p1029_p0), %s1023_s6, 1024, %s1025_s8, %s180_s10, %s923_s7, %s923_s7, %s924_s11  }
  0x33   : > { %p225_p12 = scmp.lt.s32.totalorder %s920_s17, 3  ;;  %s613_s18 = sshll.u32 %s1016_s28, 2 }
  0x34   : > { %s636_s19 = sshll.u32 %s916_s16, 6  ;;  %p1270_p9 = scmp.ge.s32.totalorder %s920_s17, 1 }
  0x35   : > { %s1074_s29 = scalar_lea.hbm %s1260_s1, %s636_s19  ;;  %s207_s30 = scalar_lea.vmem [#allocation7], %s613_s18 }
  0x36   : > { %p1067_p11 = pnand %p1270_p9, %p225_p12  ;;  %s217_s4 = sshll.u32 %s207_s30, 4  ;;  %s1076_s4 = int_to_ptr.vmem [resolvable:$true] %s217_s4 }
  0x37   : > { %s204_s6 = scalar_lea.sflag [#allocation8], %s1016_s28  ;;  %s772_s8 = scalar_lea.hbm %s1074_s29, 64 }
  0x38   : > { %p773_p1 = scmp.ne.s32.totalorder %s1074_s29, %s772_s8  ;;  %s777_s7 = scalar_lea.hbm %s1260_s1, 128 }
  0x39   : > { %p778_p2 = scmp.lt.u32.totalorder %s1074_s29, %s1260_s1  ;;  %p779_p5 = scmp.lt.u32.totalorder %s777_s7, %s772_s8 }
  0x3a   : > { %p775_p6 = pnand %p773_p1, %p744_p3  ;;  %p781_p7 = scmp.lt.u32.totalorder %s772_s8, %s1074_s29 }
  0x3b   : > { %p780_p4 = por %p779_p5, %p778_p2 }
  0x3c   : > { %p776_p13 = pneg %p775_p6 }
  0x3d   : > { %p782_p10 = por %p781_p7, %p780_p4 }
  0x3f   : > { %p783_p12 = pnand %p782_p10, %p776_p13 }
  0x41   : > { %786 = shalt.err (!%p783_p12)
}
  0x42   : > { %s787_s18 = scalar_lea.vmem %s1076_s4, 64  ;;  %s925_s22 = smov [#allocation7]  }
  0x43   : > { %p788_p9 = scmp.ne.s32.totalorder %s1076_s4, %s787_s18  ;;  %s792_s23 = sshll.u32 %s925_s22, 4  ;;  %s793_s23 = int_to_ptr.vmem [resolvable:$false] %s792_s23 }
  0x44   : > { %s794_s30 = scalar_lea.vmem %s793_s23, 128  ;;  %p795_p8 = scmp.lt.s32.totalorder %s1076_s4, %s793_s23 }
  0x45   : > { %p790_p1 = pnand %p788_p9, %p744_p3  ;;  %p796_p2 = scmp.lt.s32.totalorder %s794_s30, %s787_s18 }
  0x47   : > { %p791_p6 = pneg %p790_p1  ;;  %p797_p5 = por %p796_p2, %p795_p8 }
  0x49   : > { %p798_p4 = pnand %p797_p5, %p791_p6 }
  0x4b   : > { %801 = shalt.err (!%p798_p4)
}
  0x4c   : > { %s926_s8 = smov 32   ;;  %s927_s10 = smov 2  }
  0x4d   : > { %659 = dma.hbm_to_vmem [thread:$0]  (!%p1029_p0), %s1074_s29, 64, %s1076_s4, %s204_s6, %s926_s8, %s926_s8, %s927_s10  }
  0x4e   : > { %229 = sbr.rel (%p1067_p11) target bundleno = 385 (0x181), region = 28  ;;  %s1107_s5 = sand.u32 (!%p1067_p11), 1, %s904_s13  }
  0x4f   : > { %s617_s7 = sshll.u32 (!%p1067_p11), %s1107_s5, 6  ;;  %s232_s11 = scalar_lea.sflag (!%p1067_p11), [#allocation5], %s1107_s5 }
  0x50   : > { %s235_s19 = scalar_lea.vmem (!%p1067_p11), [#allocation4], %s617_s7  ;;  %p1272_p8 = scmp.ne.s32.totalorder (!%p1067_p11), %s1266_s24, 0 }
  0x55   : > { %883 = dma.done.wait (%p1272_p8), %s232_s11, 1024  }
  0x56   : > { %885 = vsyncadd (%p1272_p8), %s232_s11, 4294966272  ;;  %s618_s28 = sshll.u32 %s1107_s5, 2  ;;  %s241_s9 = scalar_lea.sflag [#allocation8], %s1107_s5 }
  0x57   : > { %s1117_s21 = scalar_lea.vmem [#allocation7], %s618_s28 }
  0x58   : > { %887 = dma.done.wait (%p1272_p8), %s241_s9, 64  }
  0x59   : > { %889 = vsyncadd (%p1272_p8), %s241_s9, 4294967232  ;;  %v305_v0 = vld [vmem:[%s235_s19] sm:$0xff]  ;;  %v306_v1 = vld [vmem:[%s235_s19 + $0x8] sm:$0xff]  ;;  %v288_v47 = vlaneseq  ;;  %vm382_vm13 = vcmask 130048   ;;  %s619_s24 = sshll.u32 %s1107_s5, 3  ;;  %s631_s29 = sshll.u32 %s912_s15, 7 }
  0x5a   : > { %v1123_v2 = vld [vmem:[%s235_s19 + $0x10] sm:$0xff]  ;;  %v1125_v3 = vld [vmem:[%s235_s19 + $0x18] sm:$0xff]  ;;  %v1127_v4 = vld [vmem:[%s235_s19 + $0x20] sm:$0xff]  ;;  %s269_s4 = scalar_lea.vmem [#allocation9], %s619_s24  ;;  %s1170_s18 = scalar_lea.vmem [#allocation10], %s619_s24 }
  0x5b   : > { %v310_v5 = vmax.f32 %v305_v0, %v1123_v2  ;;  %v311_v6 = vmax.f32 %v306_v1, %v1125_v3  ;;  %v1131_v7 = vld [vmem:[%s235_s19 + $0x28] sm:$0xff]  ;;  %v1133_v8 = vld [vmem:[%s235_s19 + $0x30] sm:$0xff]  ;;  %v1135_v9 = vld [vmem:[%s235_s19 + $0x38] sm:$0xff]  ;;  %v289_v51 = vand.u32 127, %v288_v47  ;;  %s446_s6 = sshll.u32 %s269_s4, 4  ;;  %s460_s22 = sshll.u32 %s1170_s18, 4  ;;  %s1180_s6 = int_to_ptr.vmem [resolvable:$true] %s446_s6  ;;  %s1182_s22 = int_to_ptr.vmem [resolvable:$true] %s460_s22 }
  0x5c   : > { %v638_v33 = vld [vmem:[%s1117_s21] sm:$0xf]   ;;  %s1178_s8 = scalar_lea.hbm %s1261_s2, %s631_s29  ;;  %s427_s7 = scalar_lea.sflag [#allocation6], %s1107_s5 }
  0x5d   : > { %v315_v10 = vmax.f32 %v310_v5, %v1127_v4  ;;  %v316_v11 = vmax.f32 %v311_v6, %v1131_v7  ;;  %v639_v39 = vunpack.c.0.s8 %v638_v33  ;;  %v640_v42 = vunpack.c.1.s8 %v638_v33  ;;  %s802_s11 = scalar_lea.vmem %s1180_s6, 128  ;;  %p1273_p3 = scmp.ne.s32.totalorder %s1267_s25, 0 }
  0x5e   : > { %vm298_vm8 = vcmp.lt.s32.totalorder %v289_v51, 16  ;;  %p803_p0 = scmp.ne.s32.totalorder %s1180_s6, %s802_s11  ;;  %s929_s19 = smov [#allocation9]  }
  0x5f   : > { %v1140_v12 = vmax.f32 %v315_v10, %v1133_v8  ;;  %v1143_v13 = vmax.f32 %v316_v11, %v1135_v9  ;;  %vm328_vm0 = vcmp.eq.s32.totalorder %v639_v39, 0  ;;  %vm329_vm1 = vcmp.eq.s32.totalorder %v640_v42, 0  ;;  %s806_s28 = sshll.u32 %s929_s19, 4  ;;  %s807_s28 = int_to_ptr.vmem [resolvable:$false] %s806_s28 }
  0x60   : > { %v330_v48 = vsel %vm328_vm0, %v305_v0, 0.0  ;;  %vm340_vm2 = vcmp.eq.s32.totalorder %v639_v39, 1  ;;  %v331_v49 = vsel %vm329_vm1, %v306_v1, 0.0  ;;  %vm341_vm3 = vcmp.eq.s32.totalorder %v640_v42, 1  ;;  %p804_p11 = pnand %p803_p0, %p1273_p3  ;;  %s808_s9 = scalar_lea.vmem %s807_s28, 256 }
  0x61   : > { %v322_v14 = vsub.f32 %v305_v0, %v1140_v12  ;;  %v323_v15 = vsub.f32 %v306_v1, %v1143_v13  ;;  %v332_v16 = vsub.f32 %v1123_v2, %v1140_v12  ;;  %v333_v17 = vsub.f32 %v1125_v3, %v1143_v13  ;;  %p809_p7 = scmp.lt.s32.totalorder %s1180_s6, %s807_s28  ;;  %p810_p10 = scmp.lt.s32.totalorder %s808_s9, %s802_s11 }
  0x62   : > { %v344_v18 = vsub.f32 %v1127_v4, %v1140_v12  ;;  %v345_v19 = vsub.f32 %v1131_v7, %v1143_v13  ;;  %v356_v23 = vsub.f32 %v1133_v8, %v1140_v12  ;;  %v357_v25 = vsub.f32 %v1135_v9, %v1143_v13  ;;  %p805_p13 = pneg %p804_p11 }
  0x63   : > { %v324_v20 = vmul.f32 1.442695, %v322_v14  ;;  %v326_v21 = vmul.f32 1.442695, %v323_v15  ;;  %v334_v22 = vmul.f32 1.442695, %v332_v16  ;;  %v342_v50 = vsel %vm340_vm2, %v1123_v2, %v330_v48  ;;  %p811_p12 = por %p810_p10, %p809_p7 }
  0x64   : > { %v336_v24 = vmul.f32 1.442695, %v333_v17  ;;  %v346_v26 = vmul.f32 1.442695, %v344_v18  ;;  %v348_v27 = vmul.f32 1.442695, %v345_v19  ;;  %v343_v52 = vsel %vm341_vm3, %v1125_v3, %v331_v49 }
  0x65   : > { %722 = vpow2.f32 %v324_v20  ;;  %v358_v28 = vmul.f32 1.442695, %v356_v23  ;;  %v360_v29 = vmul.f32 1.442695, %v357_v25  ;;  %vm352_vm4 = vcmp.eq.s32.totalorder %v639_v39, 2  ;;  %p812_p9 = pnand %p811_p12, %p805_p13 }
  0x66   : > { %724 = vpow2.f32 %v326_v21  ;;  %vm353_vm5 = vcmp.eq.s32.totalorder %v640_v42, 2  ;;  %v354_v53 = vsel %vm352_vm4, %v1127_v4, %v342_v50  ;;  %vm364_vm6 = vcmp.eq.s32.totalorder %v639_v39, 3 }
  0x67   : > { %726 = vpow2.f32 %v334_v22  ;;  %v355_v55 = vsel %vm353_vm5, %v1131_v7, %v343_v52  ;;  %vm365_vm7 = vcmp.eq.s32.totalorder %v640_v42, 3  ;;  %vm374_vm9 = vcmp.ne.s32.totalorder %v639_v39, 4294967295 }
  0x68   : > { %728 = vpow2.f32 %v336_v24  ;;  %v366_v58 = vsel %vm364_vm6, %v1133_v8, %v354_v53  ;;  %vm375_vm10 = vcmp.ne.s32.totalorder %v640_v42, 4294967295  ;;  %v367_v60 = vsel %vm365_vm7, %v1135_v9, %v355_v55  ;;  %vm376_vm11 = vmand %vm298_vm8, %vm374_vm9 }
  0x69   : > { %730 = vpow2.f32 %v346_v26  ;;  %vm377_vm12 = vmand %vm298_vm8, %vm375_vm10  ;;  %v928_v1 = vmov 0.0  }
  0x6a   : > { %732 = vpow2.f32 %v348_v27  ;;  %v627_v2 = vsel %vm376_vm11, 1.0, %v928_v1  ;;  %v628_v3 = vsel %vm377_vm12, 1.0, %v928_v1 }
  0x6b   : > { %734 = vpow2.f32 %v358_v28  ;;  %v399_v8 = vsel %vm382_vm13, %v627_v2, 0.0  ;;  %v400_v10 = vsel %vm382_vm13, %v628_v3, 0.0 }
  0x6c   : > { %736 = vpow2.f32 %v360_v29  ;;  %v401_v9 = vadd.f32 %v400_v10, %v399_v8 }
  0x6f   : > { %v723_v30 = vpop.eup %722 }
  0x70   : > { %v725_v31 = vpop.eup %724 }
  0x71   : > { %v727_v32 = vpop.eup %726 }
  0x72   : > { %v729_v34 = vpop.eup %728  ;;  %v338_v35 = vadd.f32 %v727_v32, %v723_v30 }
  0x73   : > { %v731_v36 = vpop.eup %730  ;;  %v339_v37 = vadd.f32 %v729_v34, %v725_v31 }
  0x74   : > { %v733_v38 = vpop.eup %732  ;;  %v350_v40 = vadd.f32 %v731_v36, %v338_v35 }
  0x75   : > { %v735_v41 = vpop.eup %734  ;;  %v351_v43 = vadd.f32 %v733_v38, %v339_v37 }
  0x76   : > { %v737_v44 = vpop.eup %736  ;;  %v362_v45 = vadd.f32 %v735_v41, %v350_v40 }
  0x77   : > { %v363_v46 = vadd.f32 %v737_v44, %v351_v43 }
  0x78   : > { %738 = vlog2.f32 %v362_v45 }
  0x79   : > { %740 = vlog2.f32 %v363_v46 }
  0x82   : > { %v739_v54 = vpop.eup %738 }
  0x83   : > { %v741_v56 = vpop.eup %740  ;;  %v369_v57 = vmul.f32 0.6931472, %v739_v54 }
  0x84   : > { %v371_v59 = vmul.f32 0.6931472, %v741_v56 }
  0x85   : > { %v372_v61 = vadd.f32 %v369_v57, %v1140_v12 }
  0x86   : > { %v373_v62 = vadd.f32 %v371_v59, %v1143_v13 }
  0x87   : > { %v378_v63 = vsub.f32 %v372_v61, %v366_v58 }
  0x88   : > { %v379_v0 = vsub.f32 %v373_v62, %v367_v60 }
  0x89   : > { %v380_v4 = vsel %vm376_vm11, %v378_v63, 0.0 }
  0x8a   : > { %v381_v5 = vsel %vm377_vm12, %v379_v0, 0.0  ;;  %v383_v6 = vsel %vm382_vm13, %v380_v4, 0.0 }
  0x8b   : > { %v384_v7 = vsel %vm382_vm13, %v381_v5, 0.0 }
  0x8c   : > { %v385_v11 = vadd.f32 %v384_v7, %v383_v6 }
  0x8e   : > { %386 = vadd.xlane.f32.xlu0 %v385_v11 }
  0x92   : > { %402 = vadd.xlane.f32.xlu0 %v401_v9 }
 0x11b   : > { %v387_v12 = vpop.xlane.xlu0 %386 }
 0x11c   : > { %v388_v13 = vrot.slane %v387_v12, 4 }
 0x11e   : > { %v389_v14 = vadd.f32 %v388_v13, %v387_v12 }
 0x11f   : > { %v403_v15 = vpop.xlane.xlu0 %402 }
 0x120   : > { %v390_v16 = vrot.slane %v389_v14, 2  ;;  %v404_v17 = vrot.slane %v403_v15, 4 }
 0x122   : > { %v405_v18 = vadd.f32 %v404_v17, %v403_v15  ;;  %v391_v19 = vadd.f32 %v390_v16, %v389_v14 }
 0x124   : > { %v406_v20 = vrot.slane %v405_v18, 2  ;;  %v392_v21 = vrot.slane %v391_v19, 1 }
 0x126   : > { %v407_v22 = vadd.f32 %v406_v20, %v405_v18  ;;  %v393_v23 = vadd.f32 %v392_v21, %v391_v19 }
 0x128   : > { %641 = vpush %v393_v23  ;;  %v408_v24 = vrot.slane %v407_v22, 1 }
 0x12a   : > { %v409_v25 = vadd.f32 %v408_v24, %v407_v22 }
 0x12c   : > { %643 = vpush %v409_v25 }
 0x159   : > { %s642_s10 = spop %641 }
 0x15a   : > { %v412_v26 = vstv %s642_s10 }
 0x15b   : > { %423 = vst [vmem:[%s269_s4] sm:$0xff] %v412_v26 }
 0x15c   : > { %815 = shalt.err (!%p812_p9)
}
 0x15d   : > { %s816_s21 = scalar_lea.hbm %s1178_s8, 128  ;;  %s820_s23 = scalar_lea.hbm %s1261_s2, 256 }
 0x15e   : > { %p817_p1 = scmp.ne.s32.totalorder %s1178_s8, %s816_s21  ;;  %p821_p5 = scmp.lt.u32.totalorder %s1178_s8, %s1261_s2 }
 0x15f   : > { %p822_p4 = scmp.lt.u32.totalorder %s820_s23, %s816_s21  ;;  %p824_p0 = scmp.lt.u32.totalorder %s816_s21, %s1178_s8 }
 0x160   : > { %p818_p6 = pnand %p817_p1, %p1273_p3 }
 0x161   : > { %p823_p8 = por %p822_p4, %p821_p5 }
 0x162   : > { %p819_p2 = pneg %p818_p6 }
 0x163   : > { %p825_p11 = por %p824_p0, %p823_p8 }
 0x165   : > { %p826_p13 = pnand %p825_p11, %p819_p2 }
 0x167   : > { %829 = shalt.err (!%p826_p13)
}
 0x168   : > { %649 = dma.vmem_to_hbm [thread:$0]  (%p1273_p3), %s1180_s6, 128, %s1178_s8, %s427_s7  }
 0x169   : > { %s644_s11 = spop %643  ;;  %s1211_s9 = scalar_lea.hbm %s1262_s3, %s631_s29 }
 0x16a   : > { %v416_v27 = vstv %s644_s11  ;;  %s432_s21 = scalar_lea.sflag [#allocation11], %s1107_s5  ;;  %s830_s24 = scalar_lea.vmem %s1182_s22, 128 }
 0x16b   : > { %425 = vst [vmem:[%s1170_s18] sm:$0xff] %v416_v27  ;;  %p831_p7 = scmp.ne.s32.totalorder %s1182_s22, %s830_s24  ;;  %s930_s4 = smov [#allocation10]  }
 0x16c   : > { %s834_s23 = sshll.u32 %s930_s4, 4  ;;  %s835_s23 = int_to_ptr.vmem [resolvable:$false] %s834_s23 }
 0x16d   : > { %p832_p10 = pnand %p831_p7, %p1273_p3  ;;  %s836_s30 = scalar_lea.vmem %s835_s23, 256 }
 0x16e   : > { %p837_p9 = scmp.lt.s32.totalorder %s1182_s22, %s835_s23  ;;  %p838_p1 = scmp.lt.s32.totalorder %s836_s30, %s830_s24 }
 0x16f   : > { %p833_p12 = pneg %p832_p10 }
 0x170   : > { %p839_p6 = por %p838_p1, %p837_p9 }
 0x172   : > { %p840_p2 = pnand %p839_p6, %p833_p12 }
 0x174   : > { %843 = shalt.err (!%p840_p2)
}
 0x175   : > { %s844_s15 = scalar_lea.hbm %s1211_s9, 128  ;;  %s848_s6 = scalar_lea.hbm %s1262_s3, 256 }
 0x176   : > { %p845_p5 = scmp.ne.s32.totalorder %s1211_s9, %s844_s15  ;;  %p849_p0 = scmp.lt.u32.totalorder %s1211_s9, %s1262_s3 }
 0x177   : > { %p850_p11 = scmp.lt.u32.totalorder %s848_s6, %s844_s15  ;;  %p852_p7 = scmp.lt.u32.totalorder %s844_s15, %s1211_s9 }
 0x178   : > { %p846_p4 = pnand %p845_p5, %p1273_p3 }
 0x179   : > { %p851_p13 = por %p850_p11, %p849_p0 }
 0x17a   : > { %p847_p8 = pneg %p846_p4 }
 0x17b   : > { %p853_p10 = por %p852_p7, %p851_p13 }
 0x17d   : > { %p854_p12 = pnand %p853_p10, %p847_p8 }
 0x17f   : > { %857 = shalt.err (!%p854_p12)
}
 0x180   : > { %650 = dma.vmem_to_hbm [thread:$0]  (%p1273_p3), %s1182_s22, 128, %s1211_s9, %s432_s21  }
 0x181 PF: > { %s472_s7 = sand.u32 1, %s900_s12   ;;  %p1274_p9 = scmp.ne.s32.totalorder %s1268_s27, 0 }
 0x182   : > { %p1275_p1 = scmp.ge.s32.totalorder %s920_s17, 2  ;;  %s473_s10 = scalar_lea.sflag [#allocation6], %s472_s7 }
 0x184   : > { %p661_p6 = pnand %p1275_p1, %p1274_p9 }
 0x186   : > { %891 = dma.done.wait (!%p661_p6), %s473_s10, 128  }
 0x187   : > { %893 = vsyncadd (!%p661_p6), %s473_s10, 4294967168  ;;  %s482_s11 = scalar_lea.sflag [#allocation11], %s472_s7 }
 0x188   : > { %895 = dma.done.wait (!%p661_p6), %s482_s11, 128  }
 0x189   : > { %897 = vsyncadd (!%p661_p6), %s482_s11, 4294967168  ;;  %s26_s17 = sadd.s32 1, %s920_s17   ;;  %s1276_s12 = smov %s904_s13 }
 0x18a   : > { %p23_p2 = scmp.ge.s32.totalorder %s26_s17, 4   ;;  %s1277_s13 = smov %s908_s14 }
 0x18b   : > { %s1278_s14 = smov %s1007_s26  ;;  %s1279_s15 = smov %s916_s16 }
 0x18c   : > { %s1280_s16 = smov %s1282_s20  ;;  %25 = sbr.rel (!%p23_p2) target bundleno = 10 (0xa), region = 114 }
 0x193   :  { %487 = vsyncpa [#allocation5], 1 }
 0x194   :  { %489 = vsyncpa [#allocation5 + $0x1], 1 }
 0x195   :  { %490 = vsyncpa [#allocation8], 1 }
 0x196   :  { %492 = vsyncpa [#allocation8 + $0x1], 1 }
 0x197   :  { %493 = vsyncpa [#allocation6], 1 }
 0x198   :  { %495 = vsyncpa [#allocation6 + $0x1], 1 }
 0x199   :  { %496 = vsyncpa [#allocation11], 1 }
 0x19a   :  { %498 = vsyncpa [#allocation11 + $0x1], 1 }

</bundles_post_ra>
